<compile_context>
chip_gen: v5e
topology: v5e:2x2
jax: 0.10.0
libtpu: 0.0.40
codegen_flags: <defaults>
</compile_context>

<pallas_src>
import functools

import jax
import jax.numpy as jnp
from jax.experimental import pallas as pl
from jax.experimental.pallas import tpu as pltpu


def _round_up(x, m):
    return (x + m - 1) // m * m


def _plan(n):
    """Returns (n_pad, tm, tk) for the aggregation grid."""
    if n <= 512:
        n_pad = _round_up(n, 8)
        return n_pad, n_pad, n_pad          # tiny graph: single block, (1, 1) grid
    if n <= 4096:
        n_pad = _round_up(n, 512)           # >= 2 row blocks (v7x has 2 TensorCores)
        return n_pad, 512, 512
    n_pad = _round_up(n, 1024)
    return n_pad, 1024, 1024


_Y_RESIDENT_MAX_BYTES = 12 << 20            # keep resident Y (x2 buffers) well under VMEM


def _use_resident_y(n_pad, f_pad):
    return n_pad * f_pad * 2 <= _Y_RESIDENT_MAX_BYTES


def _vmem_limit_bytes(tm, tk, f_pad, y_bytes):
    at_tile = tm * tk * 1                   # int8 A^T tile
    out_tile = tm * f_pad * 4               # f32 output tile (doubles as accumulator)
    small = tm * 4 + f_pad * 4              # dis rows + bias
    total = 2 * (at_tile + out_tile + small + y_bytes)   # conservatively assume x2 buffers
    return int(min(max(total + (8 << 20), 24 << 20), 48 << 20))


def _pad_to(x, rows, cols):
    r, c = x.shape
    if r == rows and c == cols:
        return x
    return jnp.pad(x, ((0, rows - r), (0, cols - c)))


# ----------------------------------------------------------------------------
# Pallas kernel: one GCN aggregation  out = act(dis ⊙ (A^T @ Ys) + b)
# with Ys = dis ⊙ (X W) precomputed.  Grid = (row blocks, K blocks).
# ----------------------------------------------------------------------------
def _gcn_agg_kernel(at_ref, ys_ref, dis_ref, b_ref, o_ref, *, tk, relu, y_resident):
    k = pl.program_id(1)

    @pl.when(k == 0)
    def _init():
        o_ref[...] = jnp.zeros_like(o_ref)

    # int8 0/1 -> bf16 is exact; the upcast is VPU work in a different VLIW slot than
    # the MXU push, so it hides under the tile's matmul.
    a_tile = at_ref[...].astype(jnp.bfloat16)
    if y_resident:
        start = pl.multiple_of(k * tk, tk)
        y_tile = ys_ref[pl.ds(start, tk), :]      # slice the VMEM-resident Y
    else:
        y_tile = ys_ref[...]                      # streamed (tk, f_pad) tile
    # Accumulate directly into the resident f32 output block (its index is constant
    # along the K axis) — no separate accumulator scratch needed.
    o_ref[...] += jnp.dot(a_tile, y_tile, preferred_element_type=jnp.float32)

    @pl.when(k == pl.num_programs(1) - 1)
    def _finalize():
        h = dis_ref[...] * o_ref[...] + b_ref[...]
        if relu:
            h = jnp.maximum(h, 0.0)
        o_ref[...] = h


def _gcn_aggregate(at, ys, dis, bias, *, tm, tk, relu):
    n_pad = at.shape[0]
    f_pad = ys.shape[1]
    y_resident = _use_resident_y(n_pad, f_pad)
    if y_resident:
        ys_spec = pl.BlockSpec((n_pad, f_pad), lambda i, k: (0, 0))   # DMA'd once, resident
        y_bytes = n_pad * f_pad * 2
    else:
        ys_spec = pl.BlockSpec((tk, f_pad), lambda i, k: (k, 0))      # fallback: stream tiles
        y_bytes = tk * f_pad * 2

    grid = (n_pad // tm, n_pad // tk)
    return pl.pallas_call(
        functools.partial(_gcn_agg_kernel, tk=tk, relu=relu, y_resident=y_resident),
        out_shape=jax.ShapeDtypeStruct((n_pad, f_pad), jnp.float32),
        grid_spec=pltpu.PrefetchScalarGridSpec(
            num_scalar_prefetch=0,
            grid=grid,
            in_specs=[
                pl.BlockSpec((tm, tk), lambda i, k: (i, k)),      # A^T tile (int8 0/1)
                ys_spec,                                          # (dis ⊙ Y), bf16
                pl.BlockSpec((tm, 1), lambda i, k: (i, 0)),       # D^-1/2 rows (f32)
                pl.BlockSpec((1, f_pad), lambda i, k: (0, 0)),    # bias (f32)
            ],
            out_specs=pl.BlockSpec((tm, f_pad), lambda i, k: (i, 0)),
        ),
        compiler_params=pltpu.CompilerParams(
            dimension_semantics=("parallel", "arbitrary"),
            vmem_limit_bytes=_vmem_limit_bytes(tm, tk, f_pad, y_bytes),
        ),
    )(at, ys, dis, bias)


# ----------------------------------------------------------------------------
# Full forward pass.
# ----------------------------------------------------------------------------
@jax.jit
def omics2_decoder_forward(emb, adj, w1, b1, w2, b2):
    n = emb.shape[0]
    hidden = w1.shape[1]
    input_dim = w2.shape[1]

    n_pad, tm, tk = _plan(n)
    f1 = _round_up(hidden, 128)
    f2 = _round_up(input_dim, 128)          # lane-dense output (64 -> 128)

    # --- fused graph preprocessing: single pass, no f32 N^2 temporary ---
    eye = jnp.eye(n, dtype=bool)
    at_bool = (adj.T != 0) | eye                                   # A^T binarized + self-loops
    at_p = _pad_to(at_bool, n_pad, n_pad).astype(jnp.int8)         # int8 0/1 in HBM
    deg = jnp.sum(at_bool, axis=1, dtype=jnp.float32)              # rowsum(A^T) = in-degree of A
    dis = jnp.where(deg > 0, jax.lax.rsqrt(deg), 0.0)[:, None]     # D^-1/2, [N, 1]
    dis_p = _pad_to(dis, n_pad, 1)                                 # padded rows get dis == 0

    b1_p = _pad_to(jnp.reshape(b1, (1, -1)).astype(jnp.float32), 1, f1)
    b2_p = _pad_to(jnp.reshape(b2, (1, -1)).astype(jnp.float32), 1, f2)
    w1_p = _pad_to(w1.astype(jnp.float32), w1.shape[0], f1)
    w2_p = _pad_to(w2.astype(jnp.float32), hidden, f2)

    # TODO(synk): training-mode dropout on emb (pltpu.prng_* Bernoulli mask); identity at inference.
    x = emb.astype(jnp.float32)

    # --- GCN layer 1: tiny feature transform in XLA, aggregation + ReLU in Pallas ---
    y1 = dis * jnp.dot(x, w1_p)                                    # D^-1/2 (X W1), [N, f1]
    y1_p = _pad_to(y1, n_pad, f1).astype(jnp.bfloat16)
    h1 = _gcn_aggregate(at_p, y1_p, dis_p, b1_p, tm=tm, tk=tk, relu=True)     # [n_pad, f1]

    # --- GCN layer 2 ---
    # Padded rows of h1 equal relu(b1); they are killed here by dis_p == 0 and, independently,
    # by the zero padded columns of A^T inside the aggregation kernel.
    y2 = (dis_p * jnp.dot(h1[:, :hidden], w2_p)).astype(jnp.bfloat16)         # [n_pad, f2]
    out = _gcn_aggregate(at_p, y2, dis_p, b2_p, tm=tm, tk=tk, relu=False)     # [n_pad, f2]

    return out[:n, :input_dim]


# ----------------------------------------------------------------------------
# Reference + self-test.
# ----------------------------------------------------------------------------
def _glorot(key, shape):
    # PyG GCNConv default weight init (glorot uniform).
    fan_in, fan_out = shape
    limit = (6.0 / (fan_in + fan_out)) ** 0.5
    return jax.random.uniform(key, shape, jnp.float32, -limit, limit)


def _reference(emb, adj, w1, b1, w2, b2):
    n = adj.shape[0]
    a = jnp.where(adj != 0, 1.0, 0.0)
    a = jnp.where(jnp.eye(n, dtype=bool), 1.0, a)
    deg = a.sum(axis=0)                                   # in-degree
    dis = jnp.where(deg > 0, 1.0 / jnp.sqrt(deg), 0.0)
    a_norm = dis[:, None] * a.T * dis[None, :]
    h = a_norm @ (emb @ w1) + b1
    h = jnp.maximum(h, 0.0)
    return a_norm @ (h @ w2) + b2


def _run_case(n, out_dim, hidden, input_dim):
    key = jax.random.PRNGKey(0)
    k_emb, k_adj, k_w1, k_w2, k_b1, k_b2 = jax.random.split(key, 6)

    emb = jax.random.normal(k_emb, (n, out_dim), jnp.float32)
    adj_rand = (jax.random.uniform(k_adj, (n, n)) < 0.3).astype(jnp.float32)
    adj = jnp.maximum(adj_rand, adj_rand.T)               # symmetric spatial graph

    w1 = _glorot(k_w1, (out_dim, hidden))
    b1 = jax.random.uniform(k_b1, (hidden,), jnp.float32, -0.05, 0.05)
    w2 = _glorot(k_w2, (hidden, input_dim))
    b2 = jax.random.uniform(k_b2, (input_dim,), jnp.float32, -0.05, 0.05)

    out = jax.block_until_ready(omics2_decoder_forward(emb, adj, w1, b1, w2, b2))
    ref = _reference(emb, adj, w1, b1, w2, b2)

    assert out.shape == (n, input_dim)
    # int8 adjacency is exact (0/1); bf16 cast of the (dis*Y) operands sets the tolerance.
    err = float(jnp.max(jnp.abs(out - ref)))
    assert jnp.allclose(out, ref, atol=3e-2, rtol=3e-2), err


if __name__ == "__main__":
    # Small shapes consistent with the module:
    #   emb: [N, out_dim], adj: [N, N]; GCNConv(out_dim, 256) -> GCNConv(256, input_dim)
    _run_case(16, 32, 256, 64)     # tiny graph: single-block path
    _run_case(700, 32, 256, 64)    # tiled path: n_pad=1024, grid (2,2), K-accumulation,
                                   # padded rows/columns, resident-Y dynamic slicing
    print("KERNEL_OK")
</pallas_src>

<mosaic_0001>
module attributes {stable_mosaic.version = 11 : i64} {
  func.func @_gcn_agg_kernel(%arg0: i32, %arg1: i32, %arg2: memref<16x16xi8, #tpu.memory_space<vmem>>, %arg3: memref<16x256xbf16, #tpu.memory_space<vmem>>, %arg4: memref<16x1xf32, #tpu.memory_space<vmem>>, %arg5: memref<1x256xf32, #tpu.memory_space<vmem>>, %arg6: memref<16x256xf32, #tpu.memory_space<vmem>>) attributes {dimension_semantics = [#tpu.dimension_semantics<parallel>, #tpu.dimension_semantics<arbitrary>], iteration_bounds = array<i64: 1, 1>, scalar_prefetch = 0 : i64, scratch_operands = 0 : i64, tpu.core_type = #tpu.core_type<tc>, window_params = [{transform_indices = @transform_0, window_bounds = array<i64: 16, 16>}, {pipeline_mode = #tpu.pipeline_mode<synchronous>, transform_indices = @transform_1, window_bounds = array<i64: 16, 256>}, {transform_indices = @transform_2, window_bounds = array<i64: 16, 1>}, {pipeline_mode = #tpu.pipeline_mode<synchronous>, transform_indices = @transform_3, window_bounds = array<i64: 1, 256>}, {transform_indices = @transform_4, window_bounds = array<i64: 16, 256>}]} {
    %c0_i32 = arith.constant 0 : i32
    %0 = arith.cmpi eq, %arg1, %c0_i32 : i32
    %1 = arith.extui %0 : i1 to i32
    %c0_i32_0 = arith.constant 0 : i32
    %2 = arith.cmpi ne, %1, %c0_i32_0 : i32
    scf.if %2 {
      %cst_9 = arith.constant 0.000000e+00 : f32
      %16 = vector.broadcast %cst_9 : f32 to vector<16x256xf32>
      %c0_10 = arith.constant 0 : index
      %c0_11 = arith.constant 0 : index
      %17 = vector.load %arg6[%c0_10, %c0_11] : memref<16x256xf32, #tpu.memory_space<vmem>>, vector<16x256xf32>
      tpu.vector_store %arg6[%c0_10, %c0_11], %16 {strides = array<i32>} : memref<16x256xf32, #tpu.memory_space<vmem>>, vector<16x256xf32>,
    } else {
    }
    %c0 = arith.constant 0 : index
    %c0_1 = arith.constant 0 : index
    %3 = vector.load %arg2[%c0, %c0_1] : memref<16x16xi8, #tpu.memory_space<vmem>>, vector<16x16xi8>
    %4 = arith.sitofp %3 : vector<16x16xi8> to vector<16x16xbf16>
    %c16_i32 = arith.constant 16 : i32
    %5 = arith.muli %arg1, %c16_i32 : i32
    %6 = tpu.assume_multiple %5, 16 : i32
    %7 = arith.index_cast %6 : i32 to index
    %c0_2 = arith.constant 0 : index
    %8 = vector.load %arg3[%7, %c0_2] : memref<16x256xbf16, #tpu.memory_space<vmem>>, vector<16x256xbf16>
    %c0_3 = arith.constant 0 : index
    %c0_4 = arith.constant 0 : index
    %9 = vector.load %arg6[%c0_3, %c0_4] : memref<16x256xf32, #tpu.memory_space<vmem>>, vector<16x256xf32>
    %cst = arith.constant dense<0.000000e+00> : vector<16x256xf32>
    %10 = tpu.matmul %4, %8, %cst {dimension_numbers = #tpu.dot_dimension_numbers<[1], [0], [0], [1], [0, 0, 1, 1], [], []>} : vector<16x16xbf16>, vector<16x256xbf16>, vector<16x256xf32> -> vector<16x256xf32>
    %11 = arith.addf %9, %10 : vector<16x256xf32>
    %c0_5 = arith.constant 0 : index
    %c0_6 = arith.constant 0 : index
    %12 = vector.load %arg6[%c0_5, %c0_6] : memref<16x256xf32, #tpu.memory_space<vmem>>, vector<16x256xf32>
    tpu.vector_store %arg6[%c0_5, %c0_6], %11 {strides = array<i32>} : memref<16x256xf32, #tpu.memory_space<vmem>>, vector<16x256xf32>,
    %c0_i32_7 = arith.constant 0 : i32
    %13 = arith.cmpi eq, %arg1, %c0_i32_7 : i32
    %14 = arith.extui %13 : i1 to i32
    %c0_i32_8 = arith.constant 0 : i32
    %15 = arith.cmpi ne, %14, %c0_i32_8 : i32
    scf.if %15 {
      %c0_9 = arith.constant 0 : index
      %c0_10 = arith.constant 0 : index
      %16 = vector.load %arg4[%c0_9, %c0_10] : memref<16x1xf32, #tpu.memory_space<vmem>>, vector<16x1xf32>
      %c0_11 = arith.constant 0 : index
      %c0_12 = arith.constant 0 : index
      %17 = vector.load %arg6[%c0_11, %c0_12] : memref<16x256xf32, #tpu.memory_space<vmem>>, vector<16x256xf32>
      %18 = vector.broadcast %16 : vector<16x1xf32> to vector<16x256xf32>
      %19 = arith.mulf %18, %17 : vector<16x256xf32>
      %c0_13 = arith.constant 0 : index
      %c0_14 = arith.constant 0 : index
      %20 = vector.load %arg5[%c0_13, %c0_14] : memref<1x256xf32, #tpu.memory_space<vmem>>, vector<1x256xf32>
      %21 = vector.broadcast %20 : vector<1x256xf32> to vector<16x256xf32>
      %22 = arith.addf %19, %21 : vector<16x256xf32>
      %cst_15 = arith.constant 0.000000e+00 : f32
      %23 = vector.broadcast %cst_15 : f32 to vector<16x256xf32>
      %24 = arith.maximumf %22, %23 : vector<16x256xf32>
      %c0_16 = arith.constant 0 : index
      %c0_17 = arith.constant 0 : index
      %25 = vector.load %arg6[%c0_16, %c0_17] : memref<16x256xf32, #tpu.memory_space<vmem>>, vector<16x256xf32>
      tpu.vector_store %arg6[%c0_16, %c0_17], %24 {strides = array<i32>} : memref<16x256xf32, #tpu.memory_space<vmem>>, vector<16x256xf32>,
    } else {
    }
    return
  }
  func.func @transform_0(%arg0: i32, %arg1: i32) -> (i32, i32) {
    %c0_i32 = arith.constant 0 : i32
    return %arg0, %arg1 : i32, i32
  }
  func.func @transform_1(%arg0: i32, %arg1: i32) -> (i32, i32) {
    %c0_i32 = arith.constant 0 : i32
    %c0_i32_0 = arith.constant 0 : i32
    %c0_i32_1 = arith.constant 0 : i32
    return %c0_i32, %c0_i32_0 : i32, i32
  }
  func.func @transform_2(%arg0: i32, %arg1: i32) -> (i32, i32) {
    %c0_i32 = arith.constant 0 : i32
    %c0_i32_0 = arith.constant 0 : i32
    return %arg0, %c0_i32 : i32, i32
  }
  func.func @transform_3(%arg0: i32, %arg1: i32) -> (i32, i32) {
    %c0_i32 = arith.constant 0 : i32
    %c0_i32_0 = arith.constant 0 : i32
    %c0_i32_1 = arith.constant 0 : i32
    return %c0_i32, %c0_i32_0 : i32, i32
  }
  func.func @transform_4(%arg0: i32, %arg1: i32) -> (i32, i32) {
    %c0_i32 = arith.constant 0 : i32
    %c0_i32_0 = arith.constant 0 : i32
    return %arg0, %c0_i32 : i32, i32
  }
}

module attributes {stable_mosaic.version = 11 : i64} {
  func.func @_gcn_agg_kernel(%arg0: i32, %arg1: i32, %arg2: memref<16x16xi8, #tpu.memory_space<vmem>>, %arg3: memref<16x128xbf16, #tpu.memory_space<vmem>>, %arg4: memref<16x1xf32, #tpu.memory_space<vmem>>, %arg5: memref<1x128xf32, #tpu.memory_space<vmem>>, %arg6: memref<16x128xf32, #tpu.memory_space<vmem>>) attributes {dimension_semantics = [#tpu.dimension_semantics<parallel>, #tpu.dimension_semantics<arbitrary>], iteration_bounds = array<i64: 1, 1>, scalar_prefetch = 0 : i64, scratch_operands = 0 : i64, tpu.core_type = #tpu.core_type<tc>, window_params = [{transform_indices = @transform_0, window_bounds = array<i64: 16, 16>}, {pipeline_mode = #tpu.pipeline_mode<synchronous>, transform_indices = @transform_1, window_bounds = array<i64: 16, 128>}, {transform_indices = @transform_2, window_bounds = array<i64: 16, 1>}, {pipeline_mode = #tpu.pipeline_mode<synchronous>, transform_indices = @transform_3, window_bounds = array<i64: 1, 128>}, {transform_indices = @transform_4, window_bounds = array<i64: 16, 128>}]} {
    %c0_i32 = arith.constant 0 : i32
    %0 = arith.cmpi eq, %arg1, %c0_i32 : i32
    %1 = arith.extui %0 : i1 to i32
    %c0_i32_0 = arith.constant 0 : i32
    %2 = arith.cmpi ne, %1, %c0_i32_0 : i32
    scf.if %2 {
      %cst_9 = arith.constant 0.000000e+00 : f32
      %16 = vector.broadcast %cst_9 : f32 to vector<16x128xf32>
      %c0_10 = arith.constant 0 : index
      %c0_11 = arith.constant 0 : index
      %17 = vector.load %arg6[%c0_10, %c0_11] : memref<16x128xf32, #tpu.memory_space<vmem>>, vector<16x128xf32>
      tpu.vector_store %arg6[%c0_10, %c0_11], %16 {strides = array<i32>} : memref<16x128xf32, #tpu.memory_space<vmem>>, vector<16x128xf32>,
    } else {
    }
    %c0 = arith.constant 0 : index
    %c0_1 = arith.constant 0 : index
    %3 = vector.load %arg2[%c0, %c0_1] : memref<16x16xi8, #tpu.memory_space<vmem>>, vector<16x16xi8>
    %4 = arith.sitofp %3 : vector<16x16xi8> to vector<16x16xbf16>
    %c16_i32 = arith.constant 16 : i32
    %5 = arith.muli %arg1, %c16_i32 : i32
    %6 = tpu.assume_multiple %5, 16 : i32
    %7 = arith.index_cast %6 : i32 to index
    %c0_2 = arith.constant 0 : index
    %8 = vector.load %arg3[%7, %c0_2] : memref<16x128xbf16, #tpu.memory_space<vmem>>, vector<16x128xbf16>
    %c0_3 = arith.constant 0 : index
    %c0_4 = arith.constant 0 : index
    %9 = vector.load %arg6[%c0_3, %c0_4] : memref<16x128xf32, #tpu.memory_space<vmem>>, vector<16x128xf32>
    %cst = arith.constant dense<0.000000e+00> : vector<16x128xf32>
    %10 = tpu.matmul %4, %8, %cst {dimension_numbers = #tpu.dot_dimension_numbers<[1], [0], [0], [1], [0, 0, 1, 1], [], []>} : vector<16x16xbf16>, vector<16x128xbf16>, vector<16x128xf32> -> vector<16x128xf32>
    %11 = arith.addf %9, %10 : vector<16x128xf32>
    %c0_5 = arith.constant 0 : index
    %c0_6 = arith.constant 0 : index
    %12 = vector.load %arg6[%c0_5, %c0_6] : memref<16x128xf32, #tpu.memory_space<vmem>>, vector<16x128xf32>
    tpu.vector_store %arg6[%c0_5, %c0_6], %11 {strides = array<i32>} : memref<16x128xf32, #tpu.memory_space<vmem>>, vector<16x128xf32>,
    %c0_i32_7 = arith.constant 0 : i32
    %13 = arith.cmpi eq, %arg1, %c0_i32_7 : i32
    %14 = arith.extui %13 : i1 to i32
    %c0_i32_8 = arith.constant 0 : i32
    %15 = arith.cmpi ne, %14, %c0_i32_8 : i32
    scf.if %15 {
      %c0_9 = arith.constant 0 : index
      %c0_10 = arith.constant 0 : index
      %16 = vector.load %arg4[%c0_9, %c0_10] : memref<16x1xf32, #tpu.memory_space<vmem>>, vector<16x1xf32>
      %c0_11 = arith.constant 0 : index
      %c0_12 = arith.constant 0 : index
      %17 = vector.load %arg6[%c0_11, %c0_12] : memref<16x128xf32, #tpu.memory_space<vmem>>, vector<16x128xf32>
      %18 = vector.broadcast %16 : vector<16x1xf32> to vector<16x128xf32>
      %19 = arith.mulf %18, %17 : vector<16x128xf32>
      %c0_13 = arith.constant 0 : index
      %c0_14 = arith.constant 0 : index
      %20 = vector.load %arg5[%c0_13, %c0_14] : memref<1x128xf32, #tpu.memory_space<vmem>>, vector<1x128xf32>
      %21 = vector.broadcast %20 : vector<1x128xf32> to vector<16x128xf32>
      %22 = arith.addf %19, %21 : vector<16x128xf32>
      %c0_15 = arith.constant 0 : index
      %c0_16 = arith.constant 0 : index
      %23 = vector.load %arg6[%c0_15, %c0_16] : memref<16x128xf32, #tpu.memory_space<vmem>>, vector<16x128xf32>
      tpu.vector_store %arg6[%c0_15, %c0_16], %22 {strides = array<i32>} : memref<16x128xf32, #tpu.memory_space<vmem>>, vector<16x128xf32>,
    } else {
    }
    return
  }
  func.func @transform_0(%arg0: i32, %arg1: i32) -> (i32, i32) {
    %c0_i32 = arith.constant 0 : i32
    return %arg0, %arg1 : i32, i32
  }
  func.func @transform_1(%arg0: i32, %arg1: i32) -> (i32, i32) {
    %c0_i32 = arith.constant 0 : i32
    %c0_i32_0 = arith.constant 0 : i32
    %c0_i32_1 = arith.constant 0 : i32
    return %c0_i32, %c0_i32_0 : i32, i32
  }
  func.func @transform_2(%arg0: i32, %arg1: i32) -> (i32, i32) {
    %c0_i32 = arith.constant 0 : i32
    %c0_i32_0 = arith.constant 0 : i32
    return %arg0, %c0_i32 : i32, i32
  }
  func.func @transform_3(%arg0: i32, %arg1: i32) -> (i32, i32) {
    %c0_i32 = arith.constant 0 : i32
    %c0_i32_0 = arith.constant 0 : i32
    %c0_i32_1 = arith.constant 0 : i32
    return %c0_i32, %c0_i32_0 : i32, i32
  }
  func.func @transform_4(%arg0: i32, %arg1: i32) -> (i32, i32) {
    %c0_i32 = arith.constant 0 : i32
    %c0_i32_0 = arith.constant 0 : i32
    return %arg0, %c0_i32 : i32, i32
  }
}

</mosaic_0001>

<bundles_post_ra>
// kernel: omics2_decoder_forward.2
= control target key start
LH: loop header
LB: loop body
LE: loop exit
PB: predicated region body
PF: predicated region fallthrough
CT: control target
= control target key end

     0   :  { %v161_v3 = vmov 0   ;;  %vm55_vm0 = vcmask 130048   ;;  %s223_s1 = inlined_call_operand.vmem [shape: bf16[16,256], index: 1, kind: input, shape index: {}]   ;;  %s224_s0 = inlined_call_operand.vmem [shape: s8[16,16], index: 0, kind: input, shape index: {}]   ;;  %s225_s2 = inlined_call_operand.vmem [shape: f32[16,1], index: 2, kind: input, shape index: {}]   ;;  %s226_s3 = inlined_call_operand.vmem [shape: f32[1,256], index: 3, kind: input, shape index: {}]   ;;  %s227_s4 = inlined_call_operand.vmem [shape: f32[16,256], index: 4, kind: output, shape index: {}]  }
   0x1   :  { %v144_v0 = vld [vmem:[%s223_s1] sm:$0xf]  ;;  %v153_v1 = vld [vmem:[%s223_s1 + $0x4] sm:$0xf0]  ;;  %v152_v2 = vld [vmem:[%s223_s1 + $0x4] sm:$0xf]  ;;  %160 = vset.pattern.permute.xlu0 %v161_v3 }
   0x2   :  { %v145_v4 = vor.u32 %v153_v1, %v144_v0  ;;  %v146_v5 = vld [vmem:[%s223_s1 + $0x8] sm:$0xf0]  ;;  %v155_v6 = vld [vmem:[%s224_s0] sm:$0xf]  }
   0x3   :  { %v98_v7 = vld [vmem:[%s225_s2] sm:$0xff]  ;;  %v149_v8 = vor.u32 %v152_v2, %v146_v5  ;;  %v156_v9 = vunpack.c.0.s8 %v155_v6  ;;  %v157_v10 = vunpack.c.1.s8 %v155_v6  ;;  %v99_v14 = vld [vmem:[%s225_s2 + $0x8] sm:$0xff] }
   0x4   :  { %106 = vperm.xlu0 %160, %v98_v7   ;;  %66 = vmatpush.bf16.msra.mxu0 %v145_v4  ;;  %v118_v15 = vld [vmem:[%s226_s3] sm:$0x3] }
   0x5   :  { %80 = vmatpush.bf16.msra.mxu1 %v149_v8  ;;  %v30_v11 = vcvt.s32.f32 %v156_v9  ;;  %v31_v12 = vcvt.s32.f32 %v157_v10  ;;  %v120_v19 = vperm.slane %v118_v15, 0  ;;  %v121_v20 = vperm.slane %v118_v15, 1 }
   0x7   :  { %v32_v13 = vpack.c.bf16 %v31_v12, %v30_v11 }
   0x9   :  { %150 = vmatmul.msk.bf16.vlgmr.msra.gmra.mxu0 %vm55_vm0, %v32_v13  ;;  %151 = vmatmul.msk.bf16.vlgmr.msra.gmra.mxu1 %vm55_vm0, %v32_v13 }
   0xc   :  { %111 = vperm.xlu0 %160, %v99_v14  }
  0x76   :  { %v107_v16 = vpop.permute.xlu0 %106 }
  0x7e   :  { %v112_v29 = vpop.permute.xlu0 %111 }
  0x86   :  { %v68_v17 = vpop.f32.mrf.mxu0  ;;  %v82_v18 = vpop.f32.mrf.mxu1 }
  0x87   :  { %v114_v21 = vmul.f32 %v107_v16, %v68_v17  ;;  %v115_v22 = vmul.f32 %v107_v16, %v82_v18 }
  0x89   :  { %v124_v23 = vadd.f32 %v120_v19, %v114_v21  ;;  %v125_v24 = vadd.f32 %v121_v20, %v115_v22 }
  0x8b   :  { %v128_v25 = vmax.f32 %v124_v23, 0.0  ;;  %v129_v26 = vmax.f32 %v125_v24, 0.0 }
  0x8d   :  { %132 = vst [vmem:[%s227_s4] sm:$0xff] %v128_v25 }
  0x8e   :  { %v70_v27 = vpop.f32.mrf.mxu0  ;;  %v84_v28 = vpop.f32.mrf.mxu1  ;;  %133 = vst [vmem:[%s227_s4 + $0x8] sm:$0xff] %v129_v26 }
  0x8f   :  { %v116_v30 = vmul.f32 %v112_v29, %v70_v27  ;;  %v117_v31 = vmul.f32 %v112_v29, %v84_v28 }
  0x91   :  { %v126_v32 = vadd.f32 %v120_v19, %v116_v30  ;;  %v127_v33 = vadd.f32 %v121_v20, %v117_v31 }
  0x93   :  { %v130_v34 = vmax.f32 %v126_v32, 0.0  ;;  %v131_v35 = vmax.f32 %v127_v33, 0.0 }
  0x95   :  { %134 = vst [vmem:[%s227_s4 + $0x10] sm:$0xff] %v130_v34 }
  0x96   :  { %135 = vst [vmem:[%s227_s4 + $0x18] sm:$0xff] %v131_v35 }

// kernel: omics2_decoder_forward.3
= control target key start
LH: loop header
LB: loop body
LE: loop exit
PB: predicated region body
PF: predicated region fallthrough
CT: control target
= control target key end

     0   :  { %v159_v5 = vmov 0   ;;  %s206_s0 = inlined_call_operand.vmem [shape: s8[16,16], index: 0, kind: input, shape index: {}]   ;;  %s207_s1 = inlined_call_operand.vmem [shape: bf16[16,128], index: 1, kind: input, shape index: {}]   ;;  %s208_s2 = inlined_call_operand.vmem [shape: f32[16,1], index: 2, kind: input, shape index: {}]   ;;  %s209_s3 = inlined_call_operand.vmem [shape: f32[1,128], index: 3, kind: input, shape index: {}]   ;;  %s210_s4 = inlined_call_operand.hbm [shape: f32[16,128], index: 4, kind: output, shape index: {}]  }
   0x1   :  { %v121_v0 = vld [vmem:[%s207_s1] sm:$0xff]  ;;  %131 = vset.pattern.permute.xlu0 %v159_v5 }
   0x2   :  { %v123_v1 = vld [vmem:[%s206_s0] sm:$0xf]  }
   0x3   :  { %v72_v2 = vld [vmem:[%s208_s2] sm:$0xff]  ;;  %v124_v3 = vunpack.c.0.s8 %v123_v1  ;;  %v125_v4 = vunpack.c.1.s8 %v123_v1 }
   0x4   :  { %9 = vsyncpa [#allocation3], 0  ;;  %58 = vmatpush.bf16.msra.mxu0 %v121_v0  ;;  %78 = vperm.xlu0 %131, %v72_v2   ;;  %vm47_vm0 = vcmask 130048   ;;  %v73_v9 = vld [vmem:[%s208_s2 + $0x8] sm:$0xff]  ;;  %v132_v12 = vld [vmem:[%s209_s3] ss:$0 sm:$0xff] }
   0x5   :  { %v29_v6 = vcvt.s32.f32 %v124_v3  ;;  %v30_v7 = vcvt.s32.f32 %v125_v4  ;;  %s160_s23 = smov [#allocation2]   ;;  %s102_s27 = sshll.u32 %s210_s4, 4  ;;  %s103_s27 = int_to_ptr.hbm [resolvable:$true] %s102_s27 }
   0x6   :  { %s100_s24 = sshll.u32 %s160_s23, 4  ;;  %s161_s2 = smov 128   ;;  %s101_s24 = int_to_ptr.vmem [resolvable:$true] %s100_s24 }
   0x7   :  { %v31_v8 = vpack.c.bf16 %v30_v7, %v29_v6  ;;  %s162_s28 = smov 8  }
   0x9   :  { %120 = vmatmul.msk.bf16.vlgmr.msra.gmra.mxu0 %vm47_vm0, %v31_v8 }
   0xc   :  { %83 = vperm.xlu0 %131, %v73_v9  }
  0x76   :  { %v79_v11 = vpop.permute.xlu0 %78 }
  0x7e   :  { %v84_v16 = vpop.permute.xlu0 %83 }
  0x86   :  { %v60_v10 = vpop.f32.mrf.mxu0 }
  0x87   :  { %v86_v13 = vmul.f32 %v79_v11, %v60_v10 }
  0x89   :  { %v92_v14 = vadd.f32 %v132_v12, %v86_v13 }
  0x8b   :  { %94 = vst [vmem:[#allocation2] sm:$0xff] %v92_v14 }
  0x8e   :  { %v62_v15 = vpop.f32.mrf.mxu0 }
  0x8f   :  { %v87_v17 = vmul.f32 %v84_v16, %v62_v15 }
  0x91   :  { %v93_v18 = vadd.f32 %v132_v12, %v87_v17 }
  0x93   :  { %95 = vst [vmem:[#allocation2 + $0x8] sm:$0xff] %v93_v18 }
  0x94   :  { %108 = dma.vmem_to_hbm [thread:$0]  %s101_s24, 256, %s103_s27, [#allocation3], %s161_s2, %s161_s2, %s162_s28  }
  0x95   :  { %157 = dma.done.wait [#allocation3], 256  }
  0x96   :  { %158 = vsyncadd [#allocation3], 4294967040 }
  0x97   :  { %113 = vsyncpa [#allocation3], 1 }

</bundles_post_ra>
